<compile_context>
chip_gen: v6e
topology: v6e:2x2x1
jax: 0.10.0
libtpu: 0.0.40
codegen_flags: <defaults>
</compile_context>

<pallas_src>
import math

import jax
import jax.numpy as jnp
from jax import lax
from jax.experimental import pallas as pl
from jax.experimental.pallas import tpu as pltpu


def _mha_kernel(x_ref,
                w_in_ref, b_in_ref,
                whq_ref, bhq_ref, whk_ref, bhk_ref, whv_ref, bhv_ref,
                wo_ref, bo_ref,
                o_ref,
                q_scr, k_scr, v_scr, acc_scr):
    h = pl.program_id(1)
    n_heads = pl.num_programs(1)
    S, D = x_ref.shape
    bf16 = jnp.bfloat16
    f32 = jnp.float32

    # Once per batch element (head step 0): fused q/k/v input embeddings as a
    # single lane-dense (S, D) @ (D, 3D) matmul + bias + ReLU, cached in VMEM.
    @pl.when(h == 0)
    def _():
        qkv = jnp.dot(x_ref[...], w_in_ref[...], preferred_element_type=f32)
        qkv = jnp.maximum(qkv + b_in_ref[...], 0.0)       # (S, 3D) f32
        q_scr[...] = qkv[:, 0:D].astype(bf16)
        k_scr[...] = qkv[:, D:2 * D].astype(bf16)
        v_scr[...] = qkv[:, 2 * D:3 * D].astype(bf16)
        acc_scr[...] = jnp.zeros_like(acc_scr)

    # Per-head projections: plain 2-D (S, D) @ (D, d_h) matmuls against this
    # head's weight block (no activation replication across heads).
    qh = jnp.dot(q_scr[...], whq_ref[...], preferred_element_type=f32) + bhq_ref[...]
    kh = jnp.dot(k_scr[...], whk_ref[...], preferred_element_type=f32) + bhk_ref[...]
    vh = jnp.dot(v_scr[...], whv_ref[...], preferred_element_type=f32) + bhv_ref[...]

    # Attention scores (1/sqrt(d_h) is already folded into whq/bhq).
    # Contraction on the trailing dim of both operands -> no explicit kh.T.
    s = lax.dot_general(qh.astype(bf16), kh.astype(bf16),
                        dimension_numbers=(((1,), (1,)), ((), ())),
                        preferred_element_type=f32)       # (S, S) f32

    # Numerically stable softmax; normalization deferred to after p @ v.
    m = jnp.max(s, axis=-1, keepdims=True)
    p = jnp.exp(s - m)
    l = jnp.sum(p, axis=-1, keepdims=True)                # (S, 1) f32

    o_un = jnp.dot(p.astype(bf16), vh.astype(bf16),
                   preferred_element_type=f32)            # (S, d_h) f32
    o_h = o_un * pl.reciprocal(l, approx=True)

    # Output linear with the head concat folded into the head-grid reduction:
    # acc += o_h @ wo[h]; bias added once at the end.
    acc_scr[...] += jnp.dot(o_h.astype(bf16), wo_ref[...],
                            preferred_element_type=f32)   # (S, D) f32

    @pl.when(h == n_heads - 1)
    def _():
        o_ref[...] = (acc_scr[...] + bo_ref[...]).astype(o_ref.dtype)


def multihead_attention(x, params, num_heads):
    """x: (B, S, D) float32.  params: dict of (in, out)-layout f32 weights."""
    B, S, D = x.shape
    assert D % num_heads == 0
    d_h = D // num_heads
    H = num_heads
    scale = 1.0 / math.sqrt(d_h)
    bf16, f32 = jnp.bfloat16, jnp.float32

    # ---- fold / repack parameters once, outside the kernel ----
    w_in = jnp.concatenate(
        [params["wq"], params["wk"], params["wv"]], axis=1).astype(bf16)     # (D, 3D)
    b_in = jnp.concatenate(
        [params["bq"], params["bk"], params["bv"]]).reshape(1, 3 * D).astype(f32)

    def head_major(w):                       # (D, H*d_h) -> (H, D, d_h)
        return jnp.transpose(w.reshape(D, H, d_h), (1, 0, 2))

    whq = (head_major(params["whq"]) * scale).astype(bf16)
    whk = head_major(params["whk"]).astype(bf16)
    whv = head_major(params["whv"]).astype(bf16)
    bhq = (params["bhq"] * scale).reshape(H, 1, d_h).astype(f32)
    bhk = params["bhk"].reshape(H, 1, d_h).astype(f32)
    bhv = params["bhv"].reshape(H, 1, d_h).astype(f32)

    wo = params["wo"].reshape(H, d_h, D).astype(bf16)                         # (H, d_h, D)
    bo = params["bo"].reshape(1, D).astype(f32)

    x_bf = x.astype(bf16)

    # ---- BlockSpecs: x/out blocked over batch, weights blocked over head ----
    in_specs = [
        pl.BlockSpec((None, S, D), lambda b, h: (b, 0, 0)),         # x
        pl.BlockSpec((D, 3 * D), lambda b, h: (0, 0)),              # w_in
        pl.BlockSpec((1, 3 * D), lambda b, h: (0, 0)),              # b_in
        pl.BlockSpec((None, D, d_h), lambda b, h: (h, 0, 0)),       # whq
        pl.BlockSpec((None, 1, d_h), lambda b, h: (h, 0, 0)),       # bhq
        pl.BlockSpec((None, D, d_h), lambda b, h: (h, 0, 0)),       # whk
        pl.BlockSpec((None, 1, d_h), lambda b, h: (h, 0, 0)),       # bhk
        pl.BlockSpec((None, D, d_h), lambda b, h: (h, 0, 0)),       # whv
        pl.BlockSpec((None, 1, d_h), lambda b, h: (h, 0, 0)),       # bhv
        pl.BlockSpec((None, d_h, D), lambda b, h: (h, 0, 0)),       # wo
        pl.BlockSpec((1, D), lambda b, h: (0, 0)),                  # bo
    ]
    out_specs = pl.BlockSpec((None, S, D), lambda b, h: (b, 0, 0))

    scratch_shapes = [
        pltpu.VMEM((S, D), bf16),    # q embedding, cached across heads
        pltpu.VMEM((S, D), bf16),    # k embedding
        pltpu.VMEM((S, D), bf16),    # v embedding
        pltpu.VMEM((S, D), f32),     # output-projection accumulator
    ]

    # ---- VMEM budget from the actual (lane-padded) buffers + headroom ----
    def pl_(n):  # lane pad
        return ((n + 127) // 128) * 128

    def ps_(n):  # sublane pad
        return ((n + 7) // 8) * 8

    block_bytes = 2 * (ps_(S) * pl_(D) * 2 + ps_(S) * pl_(D) * 4)   # x bf16 + out f32
    weight_bytes = 2 * (ps_(D) * pl_(3 * D) * 2 + 8 * pl_(3 * D) * 4          # w_in, b_in
                        + 3 * (ps_(D) * pl_(d_h) * 2 + 8 * pl_(d_h) * 4)      # q/k/v head w+b
                        + ps_(d_h) * pl_(D) * 2 + 8 * pl_(D) * 4)             # wo, bo
    scratch_bytes = 3 * ps_(S) * pl_(D) * 2 + ps_(S) * pl_(D) * 4
    interm_bytes = 2 * ps_(S) * pl_(S) * 4 + 6 * ps_(S) * pl_(D) * 4
    vmem_limit = int(min(max(block_bytes + weight_bytes + scratch_bytes
                             + interm_bytes + (8 << 20), 16 << 20), 56 << 20))

    # ---- advisory cost estimate for the XLA scheduler ----
    flops = B * (2 * S * D * 3 * D                 # fused qkv embedding
                 + H * 3 * 2 * S * D * d_h         # per-head projections
                 + H * 2 * 2 * S * S * d_h         # scores + PV
                 + H * 2 * S * d_h * D)            # output projection
    param_bytes = sum(int(a.size) * a.dtype.itemsize
                      for a in (w_in, b_in, whq, bhq, whk, bhk, whv, bhv, wo, bo))
    cost = pl.CostEstimate(flops=int(flops),
                           transcendentals=int(B * H * S * S),
                           bytes_accessed=int(B * S * D * (2 + 4) + param_bytes))

    return pl.pallas_call(
        _mha_kernel,
        out_shape=jax.ShapeDtypeStruct((B, S, D), jnp.float32),
        grid=(B, H),
        in_specs=in_specs,
        out_specs=out_specs,
        scratch_shapes=scratch_shapes,
        compiler_params=pltpu.CompilerParams(
            dimension_semantics=("parallel", "arbitrary"),
            vmem_limit_bytes=vmem_limit),
        cost_estimate=cost,
    )(x_bf, w_in, b_in, whq, bhq, whk, bhk, whv, bhv, wo, bo)


def init_params(key, inp_size, num_heads):
    """PyTorch-Linear-style init (uniform +/- 1/sqrt(fan_in)), (in, out) layout.

    Per-head linears are stacked along the output dim -> (D, D); columns
    [h*d_h:(h+1)*d_h] belong to head h (rows for wo).
    """
    D = inp_size
    d_h = D // num_heads
    n_lin = 3 + 3 * num_heads + 1
    keys = jax.random.split(key, 2 * n_lin)
    ki = iter(range(2 * n_lin))

    def lin(in_dim, out_dim):
        bound = 1.0 / math.sqrt(in_dim)
        w = jax.random.uniform(keys[next(ki)], (in_dim, out_dim),
                               minval=-bound, maxval=bound, dtype=jnp.float32)
        b = jax.random.uniform(keys[next(ki)], (out_dim,),
                               minval=-bound, maxval=bound, dtype=jnp.float32)
        return w, b

    params = {}
    params["wq"], params["bq"] = lin(D, D)
    params["wk"], params["bk"] = lin(D, D)
    params["wv"], params["bv"] = lin(D, D)

    for tag in ("q", "k", "v"):
        ws, bs = [], []
        for _ in range(num_heads):
            w, b = lin(D, d_h)
            ws.append(w)
            bs.append(b)
        params["wh" + tag] = jnp.concatenate(ws, axis=1)   # (D, D)
        params["bh" + tag] = jnp.concatenate(bs, axis=0)   # (D,)

    params["wo"], params["bo"] = lin(D, D)
    return params


def reference_mha(x, params, num_heads):
    """Pure-JAX f32 reference mirroring the PyTorch forward, for verification."""
    D = x.shape[-1]
    d_h = D // num_heads
    q = jax.nn.relu(x @ params["wq"] + params["bq"])
    k = jax.nn.relu(x @ params["wk"] + params["bk"])
    v = jax.nn.relu(x @ params["wv"] + params["bv"])
    outs = []
    for h in range(num_heads):
        sl = slice(h * d_h, (h + 1) * d_h)
        qh = q @ params["whq"][:, sl] + params["bhq"][sl]
        kh = k @ params["whk"][:, sl] + params["bhk"][sl]
        vh = v @ params["whv"][:, sl] + params["bhv"][sl]
        s = jnp.einsum("bqd,bkd->bqk", qh, kh) / math.sqrt(d_h)
        p = jax.nn.softmax(s, axis=-1)
        outs.append(jnp.einsum("bqk,bkd->bqd", p, vh))
    cat = jnp.concatenate(outs, axis=-1)
    return cat @ params["wo"] + params["bo"]


if __name__ == "__main__":
    B, S, D, H = 2, 8, 32, 4

    key = jax.random.PRNGKey(0)
    k_x, k_p = jax.random.split(key)
    x = jax.random.normal(k_x, (B, S, D), dtype=jnp.float32)
    params = init_params(k_p, D, H)

    out = multihead_attention(x, params, H)
    out = jax.block_until_ready(out)

    ref = reference_mha(x, params, H)
    assert out.shape == (B, S, D)
    # bf16 MXU inputs + approximate reciprocal => looser tolerance than pure f32.
    err = float(jnp.max(jnp.abs(out - ref)))
    assert jnp.allclose(out, ref, atol=3e-2, rtol=5e-2), f"max abs err {err}"

    print("KERNEL_OK")
</pallas_src>

<mosaic_0001>
module attributes {stable_mosaic.version = 11 : i64} {
  func.func @_mha_kernel(%arg0: i32, %arg1: i32, %arg2: memref<1x8x32xbf16, #tpu.memory_space<vmem>>, %arg3: memref<32x96xbf16, #tpu.memory_space<vmem>>, %arg4: memref<1x96xf32, #tpu.memory_space<vmem>>, %arg5: memref<1x32x8xbf16, #tpu.memory_space<vmem>>, %arg6: memref<1x1x8xf32, #tpu.memory_space<vmem>>, %arg7: memref<1x32x8xbf16, #tpu.memory_space<vmem>>, %arg8: memref<1x1x8xf32, #tpu.memory_space<vmem>>, %arg9: memref<1x32x8xbf16, #tpu.memory_space<vmem>>, %arg10: memref<1x1x8xf32, #tpu.memory_space<vmem>>, %arg11: memref<1x8x32xbf16, #tpu.memory_space<vmem>>, %arg12: memref<1x32xf32, #tpu.memory_space<vmem>>, %arg13: memref<1x8x32xf32, #tpu.memory_space<vmem>>, %arg14: memref<8x32xbf16, #tpu.memory_space<vmem>>, %arg15: memref<8x32xbf16, #tpu.memory_space<vmem>>, %arg16: memref<8x32xbf16, #tpu.memory_space<vmem>>, %arg17: memref<8x32xf32, #tpu.memory_space<vmem>>) attributes {dimension_semantics = [#tpu.dimension_semantics<parallel>, #tpu.dimension_semantics<arbitrary>], iteration_bounds = array<i64: 2, 4>, scalar_prefetch = 0 : i64, scratch_operands = 4 : i64, tpu.core_type = #tpu.core_type<tc>, window_params = [{transform_indices = @transform_0, window_bounds = array<i64: 1, 8, 32>}, {pipeline_mode = #tpu.pipeline_mode<synchronous>, transform_indices = @transform_1, window_bounds = array<i64: 32, 96>}, {pipeline_mode = #tpu.pipeline_mode<synchronous>, transform_indices = @transform_2, window_bounds = array<i64: 1, 96>}, {transform_indices = @transform_3, window_bounds = array<i64: 1, 32, 8>}, {transform_indices = @transform_4, window_bounds = array<i64: 1, 1, 8>}, {transform_indices = @transform_5, window_bounds = array<i64: 1, 32, 8>}, {transform_indices = @transform_6, window_bounds = array<i64: 1, 1, 8>}, {transform_indices = @transform_7, window_bounds = array<i64: 1, 32, 8>}, {transform_indices = @transform_8, window_bounds = array<i64: 1, 1, 8>}, {transform_indices = @transform_9, window_bounds = array<i64: 1, 8, 32>}, {pipeline_mode = #tpu.pipeline_mode<synchronous>, transform_indices = @transform_10, window_bounds = array<i64: 1, 32>}, {transform_indices = @transform_11, window_bounds = array<i64: 1, 8, 32>}]} {
    %c0_i32 = arith.constant 0 : i32
    %0 = arith.cmpi eq, %arg1, %c0_i32 : i32
    %1 = arith.extui %0 : i1 to i32
    %c0_i32_0 = arith.constant 0 : i32
    %2 = arith.cmpi ne, %1, %c0_i32_0 : i32
    scf.if %2 {
      %c0_39 = arith.constant 0 : index
      %c0_40 = arith.constant 0 : index
      %c0_41 = arith.constant 0 : index
      %53 = vector.load %arg2[%c0_39, %c0_40, %c0_41] : memref<1x8x32xbf16, #tpu.memory_space<vmem>>, vector<1x8x32xbf16>
      %54 = vector.shape_cast %53 : vector<1x8x32xbf16> to vector<8x32xbf16>
      %c0_42 = arith.constant 0 : index
      %c0_43 = arith.constant 0 : index
      %55 = vector.load %arg3[%c0_42, %c0_43] : memref<32x96xbf16, #tpu.memory_space<vmem>>, vector<32x96xbf16>
      %cst_44 = arith.constant dense<0.000000e+00> : vector<8x96xf32>
      %56 = tpu.matmul %54, %55, %cst_44 {dimension_numbers = #tpu.dot_dimension_numbers<[1], [0], [0], [1], [0, 0, 1, 1], [], []>} : vector<8x32xbf16>, vector<32x96xbf16>, vector<8x96xf32> -> vector<8x96xf32>
      %c0_45 = arith.constant 0 : index
      %c0_46 = arith.constant 0 : index
      %57 = vector.load %arg4[%c0_45, %c0_46] : memref<1x96xf32, #tpu.memory_space<vmem>>, vector<1x96xf32>
      %58 = vector.broadcast %57 : vector<1x96xf32> to vector<8x96xf32>
      %59 = arith.addf %56, %58 : vector<8x96xf32>
      %cst_47 = arith.constant 0.000000e+00 : f32
      %60 = vector.broadcast %cst_47 : f32 to vector<8x96xf32>
      %61 = arith.maximumf %59, %60 : vector<8x96xf32>
      %62 = vector.extract_strided_slice %61 {offsets = [0, 0], sizes = [8, 32], strides = [1, 1]} : vector<8x96xf32> to vector<8x32xf32>
      %63 = arith.truncf %62 : vector<8x32xf32> to vector<8x32xbf16>
      %c0_48 = arith.constant 0 : index
      %c0_49 = arith.constant 0 : index
      %64 = vector.load %arg14[%c0_48, %c0_49] : memref<8x32xbf16, #tpu.memory_space<vmem>>, vector<8x32xbf16>
      tpu.vector_store %arg14[%c0_48, %c0_49], %63 {strides = array<i32>} : memref<8x32xbf16, #tpu.memory_space<vmem>>, vector<8x32xbf16>,
      %65 = vector.extract_strided_slice %61 {offsets = [0, 32], sizes = [8, 32], strides = [1, 1]} : vector<8x96xf32> to vector<8x32xf32>
      %66 = arith.truncf %65 : vector<8x32xf32> to vector<8x32xbf16>
      %c0_50 = arith.constant 0 : index
      %c0_51 = arith.constant 0 : index
      %67 = vector.load %arg15[%c0_50, %c0_51] : memref<8x32xbf16, #tpu.memory_space<vmem>>, vector<8x32xbf16>
      tpu.vector_store %arg15[%c0_50, %c0_51], %66 {strides = array<i32>} : memref<8x32xbf16, #tpu.memory_space<vmem>>, vector<8x32xbf16>,
      %68 = vector.extract_strided_slice %61 {offsets = [0, 64], sizes = [8, 32], strides = [1, 1]} : vector<8x96xf32> to vector<8x32xf32>
      %69 = arith.truncf %68 : vector<8x32xf32> to vector<8x32xbf16>
      %c0_52 = arith.constant 0 : index
      %c0_53 = arith.constant 0 : index
      %70 = vector.load %arg16[%c0_52, %c0_53] : memref<8x32xbf16, #tpu.memory_space<vmem>>, vector<8x32xbf16>
      tpu.vector_store %arg16[%c0_52, %c0_53], %69 {strides = array<i32>} : memref<8x32xbf16, #tpu.memory_space<vmem>>, vector<8x32xbf16>,
      %cst_54 = arith.constant 0.000000e+00 : f32
      %71 = vector.broadcast %cst_54 : f32 to vector<8x32xf32>
      %c0_55 = arith.constant 0 : index
      %c0_56 = arith.constant 0 : index
      %72 = vector.load %arg17[%c0_55, %c0_56] : memref<8x32xf32, #tpu.memory_space<vmem>>, vector<8x32xf32>
      tpu.vector_store %arg17[%c0_55, %c0_56], %71 {strides = array<i32>} : memref<8x32xf32, #tpu.memory_space<vmem>>, vector<8x32xf32>,
    } else {
    }
    %c0 = arith.constant 0 : index
    %c0_1 = arith.constant 0 : index
    %3 = vector.load %arg14[%c0, %c0_1] : memref<8x32xbf16, #tpu.memory_space<vmem>>, vector<8x32xbf16>
    %c0_2 = arith.constant 0 : index
    %c0_3 = arith.constant 0 : index
    %c0_4 = arith.constant 0 : index
    %4 = vector.load %arg5[%c0_2, %c0_3, %c0_4] : memref<1x32x8xbf16, #tpu.memory_space<vmem>>, vector<1x32x8xbf16>
    %5 = vector.shape_cast %4 : vector<1x32x8xbf16> to vector<32x8xbf16>
    %cst = arith.constant dense<0.000000e+00> : vector<8x8xf32>
    %6 = tpu.matmul %3, %5, %cst {dimension_numbers = #tpu.dot_dimension_numbers<[1], [0], [0], [1], [0, 0, 1, 1], [], []>} : vector<8x32xbf16>, vector<32x8xbf16>, vector<8x8xf32> -> vector<8x8xf32>
    %c0_5 = arith.constant 0 : index
    %c0_6 = arith.constant 0 : index
    %c0_7 = arith.constant 0 : index
    %7 = vector.load %arg6[%c0_5, %c0_6, %c0_7] : memref<1x1x8xf32, #tpu.memory_space<vmem>>, vector<1x1x8xf32>
    %8 = vector.shape_cast %7 : vector<1x1x8xf32> to vector<1x8xf32>
    %9 = vector.broadcast %8 : vector<1x8xf32> to vector<8x8xf32>
    %10 = arith.addf %6, %9 : vector<8x8xf32>
    %c0_8 = arith.constant 0 : index
    %c0_9 = arith.constant 0 : index
    %11 = vector.load %arg15[%c0_8, %c0_9] : memref<8x32xbf16, #tpu.memory_space<vmem>>, vector<8x32xbf16>
    %c0_10 = arith.constant 0 : index
    %c0_11 = arith.constant 0 : index
    %c0_12 = arith.constant 0 : index
    %12 = vector.load %arg7[%c0_10, %c0_11, %c0_12] : memref<1x32x8xbf16, #tpu.memory_space<vmem>>, vector<1x32x8xbf16>
    %13 = vector.shape_cast %12 : vector<1x32x8xbf16> to vector<32x8xbf16>
    %cst_13 = arith.constant dense<0.000000e+00> : vector<8x8xf32>
    %14 = tpu.matmul %11, %13, %cst_13 {dimension_numbers = #tpu.dot_dimension_numbers<[1], [0], [0], [1], [0, 0, 1, 1], [], []>} : vector<8x32xbf16>, vector<32x8xbf16>, vector<8x8xf32> -> vector<8x8xf32>
    %c0_14 = arith.constant 0 : index
    %c0_15 = arith.constant 0 : index
    %c0_16 = arith.constant 0 : index
    %15 = vector.load %arg8[%c0_14, %c0_15, %c0_16] : memref<1x1x8xf32, #tpu.memory_space<vmem>>, vector<1x1x8xf32>
    %16 = vector.shape_cast %15 : vector<1x1x8xf32> to vector<1x8xf32>
    %17 = vector.broadcast %16 : vector<1x8xf32> to vector<8x8xf32>
    %18 = arith.addf %14, %17 : vector<8x8xf32>
    %c0_17 = arith.constant 0 : index
    %c0_18 = arith.constant 0 : index
    %19 = vector.load %arg16[%c0_17, %c0_18] : memref<8x32xbf16, #tpu.memory_space<vmem>>, vector<8x32xbf16>
    %c0_19 = arith.constant 0 : index
    %c0_20 = arith.constant 0 : index
    %c0_21 = arith.constant 0 : index
    %20 = vector.load %arg9[%c0_19, %c0_20, %c0_21] : memref<1x32x8xbf16, #tpu.memory_space<vmem>>, vector<1x32x8xbf16>
    %21 = vector.shape_cast %20 : vector<1x32x8xbf16> to vector<32x8xbf16>
    %cst_22 = arith.constant dense<0.000000e+00> : vector<8x8xf32>
    %22 = tpu.matmul %19, %21, %cst_22 {dimension_numbers = #tpu.dot_dimension_numbers<[1], [0], [0], [1], [0, 0, 1, 1], [], []>} : vector<8x32xbf16>, vector<32x8xbf16>, vector<8x8xf32> -> vector<8x8xf32>
    %c0_23 = arith.constant 0 : index
    %c0_24 = arith.constant 0 : index
    %c0_25 = arith.constant 0 : index
    %23 = vector.load %arg10[%c0_23, %c0_24, %c0_25] : memref<1x1x8xf32, #tpu.memory_space<vmem>>, vector<1x1x8xf32>
    %24 = vector.shape_cast %23 : vector<1x1x8xf32> to vector<1x8xf32>
    %25 = vector.broadcast %24 : vector<1x8xf32> to vector<8x8xf32>
    %26 = arith.addf %22, %25 : vector<8x8xf32>
    %27 = arith.truncf %10 : vector<8x8xf32> to vector<8x8xbf16>
    %28 = arith.truncf %18 : vector<8x8xf32> to vector<8x8xbf16>
    %cst_26 = arith.constant dense<0.000000e+00> : vector<8x8xf32>
    %29 = tpu.matmul %27, %28, %cst_26 {dimension_numbers = #tpu.dot_dimension_numbers<[1], [1], [0], [0], [0, 0, 1, 0], [], []>} : vector<8x8xbf16>, vector<8x8xbf16>, vector<8x8xf32> -> vector<8x8xf32>
    %cst_27 = arith.constant dense<0xFF800000> : vector<8xf32>
    %30 = vector.multi_reduction <maximumf>, %29, %cst_27 [1] : vector<8x8xf32> to vector<8xf32>
    %31 = vector.shape_cast %30 : vector<8xf32> to vector<8x1xf32>
    %32 = vector.broadcast %31 : vector<8x1xf32> to vector<8x8xf32>
    %33 = arith.subf %29, %32 : vector<8x8xf32>
    %34 = math.exp %33 : vector<8x8xf32>
    %cst_28 = arith.constant dense<0.000000e+00> : vector<8xf32>
    %35 = vector.multi_reduction <add>, %34, %cst_28 [1] : vector<8x8xf32> to vector<8xf32>
    %36 = vector.shape_cast %35 : vector<8xf32> to vector<8x1xf32>
    %37 = arith.truncf %34 : vector<8x8xf32> to vector<8x8xbf16>
    %38 = arith.truncf %26 : vector<8x8xf32> to vector<8x8xbf16>
    %cst_29 = arith.constant dense<0.000000e+00> : vector<8x8xf32>
    %39 = tpu.matmul %37, %38, %cst_29 {dimension_numbers = #tpu.dot_dimension_numbers<[1], [0], [0], [1], [0, 0, 1, 1], [], []>} : vector<8x8xbf16>, vector<8x8xbf16>, vector<8x8xf32> -> vector<8x8xf32>
    %40 = tpu.reciprocal %36 {approx = true} : vector<8x1xf32> -> vector<8x1xf32>
    %41 = vector.broadcast %40 : vector<8x1xf32> to vector<8x8xf32>
    %42 = arith.mulf %39, %41 : vector<8x8xf32>
    %c0_30 = arith.constant 0 : index
    %c0_31 = arith.constant 0 : index
    %43 = vector.load %arg17[%c0_30, %c0_31] : memref<8x32xf32, #tpu.memory_space<vmem>>, vector<8x32xf32>
    %44 = arith.truncf %42 : vector<8x8xf32> to vector<8x8xbf16>
    %c0_32 = arith.constant 0 : index
    %c0_33 = arith.constant 0 : index
    %c0_34 = arith.constant 0 : index
    %45 = vector.load %arg11[%c0_32, %c0_33, %c0_34] : memref<1x8x32xbf16, #tpu.memory_space<vmem>>, vector<1x8x32xbf16>
    %46 = vector.shape_cast %45 : vector<1x8x32xbf16> to vector<8x32xbf16>
    %cst_35 = arith.constant dense<0.000000e+00> : vector<8x32xf32>
    %47 = tpu.matmul %44, %46, %cst_35 {dimension_numbers = #tpu.dot_dimension_numbers<[1], [0], [0], [1], [0, 0, 1, 1], [], []>} : vector<8x8xbf16>, vector<8x32xbf16>, vector<8x32xf32> -> vector<8x32xf32>
    %48 = arith.addf %43, %47 : vector<8x32xf32>
    %c0_36 = arith.constant 0 : index
    %c0_37 = arith.constant 0 : index
    %49 = vector.load %arg17[%c0_36, %c0_37] : memref<8x32xf32, #tpu.memory_space<vmem>>, vector<8x32xf32>
    tpu.vector_store %arg17[%c0_36, %c0_37], %48 {strides = array<i32>} : memref<8x32xf32, #tpu.memory_space<vmem>>, vector<8x32xf32>,
    %c3_i32 = arith.constant 3 : i32
    %50 = arith.cmpi eq, %arg1, %c3_i32 : i32
    %51 = arith.extui %50 : i1 to i32
    %c0_i32_38 = arith.constant 0 : i32
    %52 = arith.cmpi ne, %51, %c0_i32_38 : i32
    scf.if %52 {
      %c0_39 = arith.constant 0 : index
      %c0_40 = arith.constant 0 : index
      %53 = vector.load %arg17[%c0_39, %c0_40] : memref<8x32xf32, #tpu.memory_space<vmem>>, vector<8x32xf32>
      %c0_41 = arith.constant 0 : index
      %c0_42 = arith.constant 0 : index
      %54 = vector.load %arg12[%c0_41, %c0_42] : memref<1x32xf32, #tpu.memory_space<vmem>>, vector<1x32xf32>
      %55 = vector.broadcast %54 : vector<1x32xf32> to vector<8x32xf32>
      %56 = arith.addf %53, %55 : vector<8x32xf32>
      %c0_43 = arith.constant 0 : index
      %c0_44 = arith.constant 0 : index
      %c0_45 = arith.constant 0 : index
      %57 = vector.load %arg13[%c0_43, %c0_44, %c0_45] : memref<1x8x32xf32, #tpu.memory_space<vmem>>, vector<1x8x32xf32>
      %58 = vector.shape_cast %57 : vector<1x8x32xf32> to vector<8x32xf32>
      %59 = vector.shape_cast %56 : vector<8x32xf32> to vector<1x8x32xf32>
      tpu.vector_store %arg13[%c0_43, %c0_44, %c0_45], %59 {strides = array<i32>} : memref<1x8x32xf32, #tpu.memory_space<vmem>>, vector<1x8x32xf32>,
    } else {
    }
    return
  }
  func.func @transform_0(%arg0: i32, %arg1: i32) -> (i32, i32, i32) {
    %c0_i32 = arith.constant 0 : i32
    %c0_i32_0 = arith.constant 0 : i32
    %c0_i32_1 = arith.constant 0 : i32
    return %arg0, %c0_i32, %c0_i32_0 : i32, i32, i32
  }
  func.func @transform_1(%arg0: i32, %arg1: i32) -> (i32, i32) {
    %c0_i32 = arith.constant 0 : i32
    %c0_i32_0 = arith.constant 0 : i32
    %c0_i32_1 = arith.constant 0 : i32
    return %c0_i32, %c0_i32_0 : i32, i32
  }
  func.func @transform_2(%arg0: i32, %arg1: i32) -> (i32, i32) {
    %c0_i32 = arith.constant 0 : i32
    %c0_i32_0 = arith.constant 0 : i32
    %c0_i32_1 = arith.constant 0 : i32
    return %c0_i32, %c0_i32_0 : i32, i32
  }
  func.func @transform_3(%arg0: i32, %arg1: i32) -> (i32, i32, i32) {
    %c0_i32 = arith.constant 0 : i32
    %c0_i32_0 = arith.constant 0 : i32
    %c0_i32_1 = arith.constant 0 : i32
    return %arg1, %c0_i32, %c0_i32_0 : i32, i32, i32
  }
  func.func @transform_4(%arg0: i32, %arg1: i32) -> (i32, i32, i32) {
    %c0_i32 = arith.constant 0 : i32
    %c0_i32_0 = arith.constant 0 : i32
    %c0_i32_1 = arith.constant 0 : i32
    return %arg1, %c0_i32, %c0_i32_0 : i32, i32, i32
  }
  func.func @transform_5(%arg0: i32, %arg1: i32) -> (i32, i32, i32) {
    %c0_i32 = arith.constant 0 : i32
    %c0_i32_0 = arith.constant 0 : i32
    %c0_i32_1 = arith.constant 0 : i32
    return %arg1, %c0_i32, %c0_i32_0 : i32, i32, i32
  }
  func.func @transform_6(%arg0: i32, %arg1: i32) -> (i32, i32, i32) {
    %c0_i32 = arith.constant 0 : i32
    %c0_i32_0 = arith.constant 0 : i32
    %c0_i32_1 = arith.constant 0 : i32
    return %arg1, %c0_i32, %c0_i32_0 : i32, i32, i32
  }
  func.func @transform_7(%arg0: i32, %arg1: i32) -> (i32, i32, i32) {
    %c0_i32 = arith.constant 0 : i32
    %c0_i32_0 = arith.constant 0 : i32
    %c0_i32_1 = arith.constant 0 : i32
    return %arg1, %c0_i32, %c0_i32_0 : i32, i32, i32
  }
  func.func @transform_8(%arg0: i32, %arg1: i32) -> (i32, i32, i32) {
    %c0_i32 = arith.constant 0 : i32
    %c0_i32_0 = arith.constant 0 : i32
    %c0_i32_1 = arith.constant 0 : i32
    return %arg1, %c0_i32, %c0_i32_0 : i32, i32, i32
  }
  func.func @transform_9(%arg0: i32, %arg1: i32) -> (i32, i32, i32) {
    %c0_i32 = arith.constant 0 : i32
    %c0_i32_0 = arith.constant 0 : i32
    %c0_i32_1 = arith.constant 0 : i32
    return %arg1, %c0_i32, %c0_i32_0 : i32, i32, i32
  }
  func.func @transform_10(%arg0: i32, %arg1: i32) -> (i32, i32) {
    %c0_i32 = arith.constant 0 : i32
    %c0_i32_0 = arith.constant 0 : i32
    %c0_i32_1 = arith.constant 0 : i32
    return %c0_i32, %c0_i32_0 : i32, i32
  }
  func.func @transform_11(%arg0: i32, %arg1: i32) -> (i32, i32, i32) {
    %c0_i32 = arith.constant 0 : i32
    %c0_i32_0 = arith.constant 0 : i32
    %c0_i32_1 = arith.constant 0 : i32
    return %arg0, %c0_i32, %c0_i32_0 : i32, i32, i32
  }
}

</mosaic_0001>

<bundles_post_ra>
// kernel: tpu_custom_call.1
= control target key start
LH: loop header
LB: loop body
LE: loop exit
PB: predicated region body
PF: predicated region fallthrough
CT: control target
= control target key end

     0   :  { %s1723_s0 = inlined_call_operand.vmem [shape: bf16[2,8,32], index: 0, kind: input, shape index: {}]   ;;  %s1724_s1 = inlined_call_operand.vmem [shape: bf16[32,96], index: 1, kind: input, shape index: {}]   ;;  %s1725_s2 = inlined_call_operand.vmem [shape: f32[1,96], index: 2, kind: input, shape index: {}]   ;;  %s1726_s3 = inlined_call_operand.vmem [shape: bf16[4,32,8], index: 3, kind: input, shape index: {}]   ;;  %s1727_s4 = inlined_call_operand.vmem [shape: f32[4,1,8], index: 4, kind: input, shape index: {}]   ;;  %s1728_s5 = inlined_call_operand.vmem [shape: bf16[4,32,8], index: 5, kind: input, shape index: {}]   ;;  %s1729_s6 = inlined_call_operand.vmem [shape: f32[4,1,8], index: 6, kind: input, shape index: {}]   ;;  %s1730_s7 = inlined_call_operand.vmem [shape: bf16[4,32,8], index: 7, kind: input, shape index: {}]   ;;  %s1731_s8 = inlined_call_operand.vmem [shape: f32[4,1,8], index: 8, kind: input, shape index: {}]   ;;  %s1732_s9 = inlined_call_operand.vmem [shape: bf16[4,8,32], index: 9, kind: input, shape index: {}]   ;;  %s1733_s10 = inlined_call_operand.vmem [shape: f32[1,32], index: 10, kind: input, shape index: {}]   ;;  %s1734_s11 = inlined_call_operand.hbm [shape: f32[2,8,32], index: 11, kind: output, shape index: {}]  }
   0x1   :  { %1748 = sst [smem:[#allocation20_spill]] %s1723_s0 }
   0x2   :  { %1749 = sst [smem:[#allocation21_spill]] %s1726_s3 }
   0x3   :  { %1750 = sst [smem:[#allocation22_spill]] %s1734_s11 }
   0x4   :  { %16 = vsyncpa [#allocation7], 0 }
   0x5   :  { %18 = vsyncpa [#allocation7 + $0x1], 0  ;;  %s1500_s17 = smov 0   ;;  %s1502_s18 = smov 0  }
   0x6   :  { %s1504_s19 = smov 0   ;;  %s1506_s20 = smov 0  }
   0x7   :  { %s1508_s21 = smov 0   ;;  %s1510_s22 = smov 0  }
   0x8   :  { %s1512_s23 = smov 0   ;;  %s1514_s24 = smov 0  }
   0x9 LB: > { %1751 = sst [smem:[#allocation9_spill]] %s1403_s17  ;;  %s1137_s25 = sadd.s32 4294967295, %s1431_s24   ;;  %s1431_s24 = sphi %s1514_s24, %s24_s24   ;;  %s1427_s23 = sphi %s1512_s23, %s1781_s23   ;;  %s1423_s22 = sphi %s1510_s22, %s1780_s22   ;;  %s1419_s21 = sphi %s1508_s21, %s1779_s21   ;;  %s1415_s20 = sphi %s1506_s20, %s1778_s20   ;;  %s1411_s19 = sphi %s1504_s19, %s1777_s19   ;;  %s1407_s18 = sphi %s1502_s18, %s1776_s18   ;;  %s1403_s17 = sphi %s1500_s17, %s1775_s17  }
   0xa   : > { %1752 = sst [smem:[#allocation10_spill]] %s1407_s18  ;;  %s1138_s26 = sadd.s32 4294967294, %s1431_s24  }
   0xb   : > { %1753 = sst [smem:[#allocation11_spill]] %s1411_s19  ;;  %s33_s27 = sadd.s32 1, %s1423_s22 }
   0xc   : > { %1754 = sst [smem:[#allocation12_spill]] %s1423_s22  ;;  %p34_p0 = scmp.ge.s32.totalorder %s33_s27, 4 }
   0xd   : > { %1755 = sst [smem:[#allocation13_spill]] %s1427_s23  ;;  %s36_s28 = sadd.s32 1, %s1427_s23 }
   0xe   : > { %1756 = sst [smem:[#allocation14_spill]] %s1431_s24  ;;  %p324_p1 = scmp.ne.s32.totalorder %s1411_s19, %s1407_s18 }
   0xf   : > { %p325_p2 = scmp.eq.s32.totalorder %s1137_s25, 7  ;;  %s1783_s27 = smov (%p34_p0, %s33_s27), 0 }
  0x10   : > { %1757 = sst [smem:[#allocation15_spill]] %s1783_s27  ;;  %s1785_s28 = smov (!%p34_p0, %s36_s28), %s1427_s23 }
  0x11   : > { %p1549_p3 = por %p325_p2, %p324_p1  ;;  %p330_p4 = scmp.ne.s32.totalorder %s1407_s18, %s1403_s17 }
  0x12   : > { %p38_p5 = scmp.ge.s32.totalorder %s1785_s28, 2  ;;  %p331_p6 = scmp.eq.s32.totalorder %s1138_s26, 7 }
  0x13   : > { %s1758_s29 = scalar_select %p1549_p3, 1, 0 }
  0x14   : > { %p1141_p7 = scmp.ge.s32.totalorder %s1431_s24, 1  ;;  %p414_p8 = scmp.lt.s32.totalorder %s1431_s24, 9 }
  0x15   : > { %1759 = sst [smem:[#allocation16_spill]] %s1758_s29  ;;  %s1787_s28 = smov (%p38_p5, %s1785_s28), 0 }
  0x16   : > { %1760 = sst [smem:[#allocation17_spill]] %s1787_s28  ;;  %p1559_p9 = por %p331_p6, %p330_p4 }
  0x17   : > { %p415_p10 = pnand %p1141_p7, %p414_p8  ;;  %s311_s12 = ssub.s32 %s1427_s23, %s1787_s28 }
  0x18   : > { %s1761_s30 = scalar_select %p1559_p9, 1, 0 }
  0x19   : > { %s314_s13 = sadd.s32 1, %s1411_s19  ;;  %p312_p11 = scmp.eq.s32.totalorder %s311_s12, 0 }
  0x1a   : > { %1762 = sst [smem:[#allocation18_spill]] %s1761_s30  ;;  %418 = sbr.rel (%p415_p10) target bundleno = 1367 (0x557), region = 64 }
  0x1b   : > { %s1567_s14 = scalar_select %p312_p11, %s1411_s19, %s314_s13  }
  0x1c   : > { %s1738_s15 = sand.u32 (!%p415_p10), 1, %s1407_s18   ;;  %p481_p12 = scmp.lt.s32.totalorder (!%p415_p10), %s1419_s21, 1 }
  0x1d   : > { %1763 = sst [smem:[#allocation19_spill]] %s1567_s14  ;;  %s1573_s16 = sshll.u32 (!%p415_p10), %s1738_s15, 3 }
  0x1e   : > { %p485_p13 = scmp.lt.s32.totalorder (!%p415_p10), %s1415_s20, 3  ;;  %s1764_s0 = sld [smem:[#allocation20_spill]] (!%p415_p10) }
  0x1f   : > { %s482_s25 = scalar_select %p481_p12, %s1419_s21, 1 }
  0x20   : > { %s1578_s26 = scalar_select %p485_p13, %s1415_s20, 3 }
  0x21   : > { %s1143_s12 = sshll.u32 %s482_s25, 2  ;;  %s1765_s3 = sld [smem:[#allocation21_spill]] }
  0x22   : > { %s1178_s23 = sshll.u32 %s1578_s26, 4  ;;  %s500_s28 = scalar_lea.vmem %s1729_s6, %s1578_s26 }
  0x23   : > { %s1596_s29 = scalar_lea.vmem %s1728_s5, %s1178_s23  ;;  %s1150_s19 = sshll.u32 %s1578_s26, 2 }
  0x24   : > { %s484_s27 = scalar_lea.vmem %s1764_s0, %s1143_s12  ;;  %s1605_s0 = scalar_lea.vmem %s1730_s7, %s1178_s23 }
  0x25   : > { %s1615_s11 = scalar_lea.vmem %s1732_s9, %s1150_s19  ;;  %s480_s24 = scalar_lea.vmem [#allocation6], %s1573_s16 }
  0x26   : > { %p1151_p0 = scmp.ne.s32.totalorder %s1415_s20, 0 }
  0x27   : > { %s1587_s15 = scalar_lea.vmem %s1765_s3, %s1178_s23  ;;  %s508_s3 = scalar_lea.vmem %s1731_s8, %s1578_s26 }
  0x28   : > { %517 = sbr.rel (%p1151_p0) target bundleno = 373 (0x175), region = 68  ;;  %s1435_s22 = smov (!%p1151_p0), 96  }
  0x29   : > { %s1436_s14 = smov (!%p1151_p0), 64  }
  0x2d   : > { %v1327_v0 = vld [vmem:[%s1724_s1 + $0x8] sm:$0xff]   ;;  %v1433_v1 = vmov 0.0   ;;  %v1328_v2 = vld [vmem:[%s1724_s1] sm:$0xff]   ;;  %vm1434_vm0 = vmmov 0   ;;  %vm542_vm1 = vcmask 261120   ;;  %vm588_vm2 = vcmask 257024  }
  0x2e   : > { %1200 = vmatprep.subr.bf16.mxu0 %v1433_v1  ;;  %1204 = vmatprep.mubr.msk.bf16.mxu0 %vm1434_vm0, %v1433_v1  ;;  %601 = vst.msk [vmem:[#allocation5] sm:$0xff] %vm542_vm1, %v1433_v1  ;;  %v518_v3 = vld [vmem:[%s484_s27] sm:$0xf] }
  0x2f   : > { %1201 = vmatpush3.bf16.msra.mxu0 %v1327_v0  ;;  %v1152_v4 = vld [vmem:[%s1725_s2] ss:$0 sm:$0xff] }
  0x30   : > { %1202 = vmatprep.subr.bf16.mxu0 %v1433_v1 }
  0x33   : > { %1203 = vmatpush3.bf16.msra.mxu0 %v1328_v2 }
  0x36   : > { %1205 = vmatmul.mubr.msk.bf16.vlgmr.msra.gmra.mxu0 %vm542_vm1, %v518_v3 }
  0xf6   : > { %v580_v5 = vpop.f32.mrf.mxu0 }
  0xf7   : > { %v581_v6 = vadd.f32 %v1152_v4, %v580_v5 }
  0xf8   : > { %v1206_v7 = vpop.f32.mrf.mxu0 }
  0xf9   : > { %v586_v8 = vmax.f32 %v581_v6, 0.0 }
  0xfa   : > { %v583_v9 = vpop.f32.mrf.mxu0 }
  0xfb   : > { %v587_v10 = vpack.c.bf16 %v586_v8, %v586_v8 }
  0xfc   : > { %v1207_v11 = vpop.f32.mrf.mxu0 }
  0xfd   : > { %593 = vrot.lane.b32.xlu0 %v587_v10, %s1435_s22  ;;  %589 = vst.msk [vmem:[#allocation2] sm:$0xf] %vm588_vm2, %v587_v10 }
 0x101   : > { %597 = vrot.lane.b32.xlu0 %v587_v10, %s1436_s14 }
 0x16f   : > { %v594_v12 = vpop.permute.xlu0 %593 }
 0x170   : > { %596 = vst.msk [vmem:[#allocation3] sm:$0xf] %vm588_vm2, %v594_v12 }
 0x173   : > { %v598_v13 = vpop.permute.xlu0 %597 }
 0x174   : > { %600 = vst.msk [vmem:[#allocation4] sm:$0xf] %vm588_vm2, %v598_v13 }
 0x175 PF: > { %v1329_v14 = vld [vmem:[%s1596_s29 + $0x8] sm:$0xff]   ;;  %v1437_v15 = vmov 0.0   ;;  %v1331_v17 = vld [vmem:[%s1596_s29] sm:$0xff]   ;;  %vm1438_vm3 = vmmov 0   ;;  %vm626_vm4 = vcmask 261120   ;;  %vm806_vm5 = vcmask 64512   ;;  %s1766_s19 = scalar_lea.vmem %s1727_s4, %s1578_s26 }
 0x176   : > { %1216 = vmatprep.subr.bf16.mxu1 %v1437_v15  ;;  %1208 = vmatprep.subr.bf16.mxu0 %v1437_v15  ;;  %v1330_v16 = vld [vmem:[%s1587_s15 + $0x8] sm:$0xff]   ;;  %v1332_v18 = vld [vmem:[%s1587_s15] sm:$0xff]   ;;  %vm867_vm6 = vcmask 1043456   ;;  %p1172_p1 = scmp.ne.s32.totalorder %s1415_s20, 3 }
 0x177   : > { %1217 = vmatpush3.bf16.msra.mxu1 %v1329_v14  ;;  %1220 = vmatprep.mubr.msk.bf16.mxu1 %vm1438_vm3, %v1437_v15  ;;  %v670_v19 = vld [vmem:[#allocation3] sm:$0xf]  ;;  %v602_v20 = vld [vmem:[#allocation2] sm:$0xf]  ;;  %v1333_v21 = vld [vmem:[%s1605_s0 + $0x8] sm:$0xff]  }
 0x178   : > { %1209 = vmatpush3.bf16.msra.mxu0 %v1330_v16  ;;  %1218 = vmatprep.subr.bf16.mxu1 %v1437_v15  ;;  %v1334_v22 = vld [vmem:[%s1605_s0] sm:$0xff]   ;;  %v913_v4 = vld [vmem:[#allocation5] sm:$0xff] }
 0x179   : > { %1210 = vmatprep.subr.bf16.mxu0 %v1437_v15  ;;  %1212 = vmatprep.mubr.msk.bf16.mxu0 %vm1438_vm3, %v1437_v15  ;;  %v1161_v24 = vld [vmem:[%s500_s28] ss:$0 sm:$0xff] }
 0x17a   : > { %v1157_v29 = vld [vmem:[%s1766_s19] ss:$0 sm:$0xff] }
 0x17b   : > { %1219 = vmatpush3.bf16.msra.mxu1 %v1331_v17  ;;  %v737_v23 = vld [vmem:[#allocation4] sm:$0xf]  ;;  %v1165_v44 = vld [vmem:[%s508_s3] ss:$0 sm:$0xff] }
 0x17c   : > { %1211 = vmatpush3.bf16.msra.mxu0 %v1332_v18  ;;  %1232 = vmatprep.subr.bf16.mxu1 %v1437_v15  ;;  %v915_v58 = vld [vmem:[%s1615_s11] sm:$0xf] }
 0x17d   : > { %1224 = vmatprep.subr.bf16.mxu0 %v1437_v15  ;;  %v920_v59 = vsel %vm867_vm6, %v915_v58, 0 }
 0x17e   : > { %1221 = vmatmul.mubr.msk.bf16.vlgmr.msra.gmra.mxu1 %vm626_vm4, %v670_v19 }
 0x17f   : > { %1213 = vmatmul.mubr.msk.bf16.vlgmr.msra.gmra.mxu0 %vm626_vm4, %v602_v20  ;;  %1234 = vmatprep.mubr.msk.bf16.mxu1 %vm1438_vm3, %v1437_v15 }
 0x180   : > { %1228 = vmatprep.mubr.msk.bf16.mxu0 %vm1438_vm3, %v1437_v15  ;;  %1225 = vmatpush3.bf16.msra.mxu0 %v1333_v21 }
 0x181   : > { %1226 = vmatprep.subr.bf16.mxu0 %v1437_v15 }
 0x184   : > { %1227 = vmatpush3.bf16.msra.mxu0 %v1334_v22 }
 0x185   : > { %1238 = vmatprep.subr.bf16.mxu0 %v1437_v15 }
 0x187   : > { %1229 = vmatmul.mubr.msk.bf16.vlgmr.msra.gmra.mxu0 %vm626_vm4, %v737_v23 }
 0x188   : > { %1240 = vmatprep.mubr.msk.bf16.mxu0 %vm1438_vm3, %v1437_v15 }
 0x23e   : > { %v731_v25 = vpop.f32.mrf.mxu1 }
 0x23f   : > { %v732_v26 = vadd.f32 %v1161_v24, %v731_v25  ;;  %v664_v27 = vpop.f32.mrf.mxu0 }
 0x240   : > { %v1222_v28 = vpop.f32.mrf.mxu1  ;;  %v665_v34 = vadd.f32 %v1157_v29, %v664_v27 }
 0x241   : > { %v805_v30 = vpack.c.bf16 %v732_v26, %v732_v26  ;;  %v1214_v31 = vpop.f32.mrf.mxu0 }
 0x242   : > { %v734_v32 = vpop.f32.mrf.mxu1  ;;  %v804_v38 = vpack.c.bf16 %v665_v34, %v665_v34 }
 0x243   : > { %v811_v33 = vsel %vm806_vm5, %v805_v30, 0  ;;  %v667_v35 = vpop.f32.mrf.mxu0 }
 0x244   : > { %v1223_v36 = vpop.f32.mrf.mxu1  ;;  %1233 = vmatpush3.bf16.xpose.msra.mxu1 %v811_v33 }
 0x245   : > { %v1215_v37 = vpop.f32.mrf.mxu0  ;;  %1244 = vmatprep.subr.bf16.mxu1 %v1437_v15 }
 0x247   : > { %v798_v45 = vpop.f32.mrf.mxu0 }
 0x248   : > { %v799_v46 = vadd.f32 %v1165_v44, %v798_v45 }
 0x249   : > { %v1230_v47 = vpop.f32.mrf.mxu0 }
 0x24a   : > { %v863_v48 = vpack.c.bf16 %v799_v46, %v799_v46 }
 0x24b   : > { %1235 = vmatmul.mubr.msk.bf16.vlgmr.msra.gmra.mxu1 %vm806_vm5, %v804_v38  ;;  %v801_v49 = vpop.f32.mrf.mxu0 }
 0x24c   : > { %1246 = vmatprep.mubr.msk.bf16.mxu1 %vm1438_vm3, %v1437_v15  ;;  %v869_v50 = vsel %vm867_vm6, %v863_v48, 0  ;;  %1245 = vmatpush3.bf16.msra.mxu1 %v920_v59 }
 0x24d   : > { %v1231_v51 = vpop.f32.mrf.mxu0  ;;  %1239 = vmatpush3.bf16.msra.mxu0 %v869_v50 }
 0x30b   : > { %v847_v39 = vpop.f32.mrf.mxu1 }
 0x30c   : > { %v853_v40 = vsel %vm806_vm5, %v847_v39, -inf }
 0x30d   : > { %854 = vmax.xlane.f32.xlu0 %v853_v40  ;;  %v1236_v41 = vpop.f32.mrf.mxu1 }
 0x30f   : > { %v850_v42 = vpop.f32.mrf.mxu1 }
 0x311   : > { %v1237_v43 = vpop.f32.mrf.mxu1 }
 0x396   : > { %v855_v52 = vpop.xlane.xlu0 %854 }
 0x397   : > { %v856_v53 = vsub.f32 %v847_v39, %v855_v52 }
 0x399   : > { %v857_v54 = vmul.f32 1.442695, %v856_v53 }
 0x39b   : > { %1335 = vpow2.f32 %v857_v54 }
 0x3a8   : > { %v1336_v55 = vpop.eup %1335 }
 0x3a9   : > { %v859_v56 = vsel %vm806_vm5, %v1336_v55, 0.0  ;;  %v862_v57 = vpack.c.bf16 %v1336_v55, %v1336_v55 }
 0x3aa   : > { %860 = vadd.xlane.f32.xlu0 %v859_v56 }
 0x3ab   : > { %1241 = vmatmul.mubr.msk.bf16.vlgmr.msra.gmra.mxu0 %vm806_vm5, %v862_v57 }
 0x433   : > { %v861_v60 = vpop.xlane.xlu0 %860 }
 0x434   : > { %1337 = vrcp.f32 %v861_v60 }
 0x441   : > { %v1338_v61 = vpop.eup %1337 }
 0x46b   : > { %v905_v62 = vpop.f32.mrf.mxu0 }
 0x46c   : > { %v912_v63 = vmul.f32 %v1338_v61, %v905_v62 }
 0x46d   : > { %v1242_v0 = vpop.f32.mrf.mxu0 }
 0x46e   : > { %v914_v1 = vpack.c.bf16 %v912_v63, %v912_v63 }
 0x46f   : > { %v908_v2 = vpop.f32.mrf.mxu0 }
 0x470   : > { %1247 = vmatmul.mubr.msk.bf16.vlgmr.msra.gmra.mxu1 %vm806_vm5, %v914_v1 }
 0x471   : > { %v1243_v3 = vpop.f32.mrf.mxu0 }
 0x530   : > { %v956_v5 = vpop.f32.mrf.mxu1 }
 0x531   : > { %v962_v6 = vadd.f32 %v956_v5, %v913_v4 }
 0x532   : > { %v1248_v7 = vpop.f32.mrf.mxu1  ;;  %967 = sbr.rel (%p1172_p1) target bundleno = 1342 (0x53e), region = 72 }
 0x533   : > { %963 = vst.msk [vmem:[#allocation5] sm:$0xff] %vm626_vm4, %v962_v6 }
 0x534   : > { %v959_v8 = vpop.f32.mrf.mxu1 }
 0x536   : > { %v1249_v9 = vpop.f32.mrf.mxu1 }
 0x537   : > { %v1173_v11 = vld [vmem:[%s1733_s10] ss:$0 sm:$0xff] }
 0x53a   : > { %v968_v10 = vld [vmem:[#allocation5] sm:$0xff] }
 0x53b   : > { %v976_v12 = vadd.f32 %v1173_v11, %v968_v10 }
 0x53d   : > { %977 = vst.msk [vmem:[%s480_s24] sm:$0xff] %vm626_vm4, %v976_v12 }
 0x53e PF: > { %s1767_s11 = sld [smem:[#allocation10_spill]]  ;;  %s1175_s25 = sshll.u32 %s1419_s21, 7 }
 0x53f   : > { %s1769_s20 = sld [smem:[#allocation22_spill]]  ;;  %s992_s22 = sshll.u32 %s480_s24, 4  ;;  %s993_s22 = int_to_ptr.vmem [resolvable:$true] %s992_s22 }
 0x540   : > { %s1339_s29 = scalar_lea.vmem %s993_s22, 128  ;;  %s1439_s15 = smov [#allocation6]  }
 0x541   : > { %p1340_p2 = scmp.ne.s32.totalorder %s993_s22, %s1339_s29  ;;  %s1343_s0 = sshll.u32 %s1439_s15, 4  ;;  %s1344_s0 = int_to_ptr.vmem [resolvable:$false] %s1343_s0 }
 0x542   : > { %s1345_s19 = scalar_lea.vmem %s1344_s0, 256  ;;  %p1346_p6 = scmp.lt.s32.totalorder %s993_s22, %s1344_s0 }
 0x543   : > { %p1341_p4 = pnand %p1340_p2, %p1549_p3  ;;  %p1347_p7 = scmp.lt.s32.totalorder %s1345_s19, %s1339_s29 }
 0x544   : > { %s1771_s14 = sand.u32 1, %s1767_s11  }
 0x545   : > { %s1770_s13 = smov %s1769_s20  ;;  %s990_s17 = scalar_lea.hbm %s1769_s20, %s1175_s25 }
 0x546   : > { %s979_s27 = scalar_lea.sflag [#allocation7], %s1771_s14  ;;  %p1342_p5 = pneg %p1341_p4 }
 0x547   : > { %p1348_p8 = por %p1347_p7, %p1346_p6 }
 0x549   : > { %p1349_p10 = pnand %p1348_p8, %p1342_p5 }
 0x54b   : > { %1352 = shalt.err (!%p1349_p10)
}
 0x54c   : > { %s1353_s21 = scalar_lea.hbm %s990_s17, 128  ;;  %s1357_s28 = scalar_lea.hbm %s1770_s13, 256 }
 0x54d   : > { %p1354_p11 = scmp.ne.s32.totalorder %s990_s17, %s1353_s21  ;;  %p1358_p0 = scmp.lt.s32.totalorder %s990_s17, %s1770_s13 }
 0x54e   : > { %p1359_p1 = scmp.lt.s32.totalorder %s1357_s28, %s1353_s21 }
 0x54f   : > { %p1355_p12 = pnand %p1354_p11, %p1549_p3 }
 0x550   : > { %p1360_p2 = por %p1359_p1, %p1358_p0 }
 0x551   : > { %p1356_p13 = pneg %p1355_p12 }
 0x553   : > { %p1361_p4 = pnand %p1360_p2, %p1356_p13 }
 0x555   : > { %1364 = shalt.err (!%p1361_p4)
}
 0x556   : > { %1250 = dma.vmem_to_hbm [thread:$0]  (%p1549_p3), %s993_s22, 128, %s990_s17, %s979_s27  }
 0x557 PF: > { %s1772_s26 = sld [smem:[#allocation14_spill]] }
 0x558   : > { %s1773_s11 = sld [smem:[#allocation9_spill]] }
 0x55d   : > { %p1256_p5 = scmp.ge.s32.totalorder %s1772_s26, 2 }
 0x55e   : > { %s1004_s23 = sand.u32 1, %s1773_s11  }
 0x55f   : > { %p1253_p6 = pnand %p1256_p5, %p1559_p9  ;;  %s1005_s12 = scalar_lea.sflag [#allocation7], %s1004_s23 }
 0x561   : > { %p1254_p7 = pneg %p1253_p6 }
 0x563   : > { %1398 = dma.done.wait (%p1254_p7), %s1005_s12, 128  }
 0x564   : > { %1400 = vsyncadd (%p1254_p7), %s1005_s12, 4294967168  ;;  %s24_s24 = sadd.s32 1, %s1772_s26   ;;  %s1775_s17 = sld [smem:[#allocation10_spill]] }
 0x565   : > { %p21_p8 = scmp.ge.s32.totalorder %s24_s24, 10   ;;  %s1776_s18 = sld [smem:[#allocation11_spill]] }
 0x566   : > { %s1777_s19 = sld [smem:[#allocation19_spill]] }
 0x567   : > { %s1778_s20 = sld [smem:[#allocation12_spill]]  ;;  %23 = sbr.rel (!%p21_p8) target bundleno = 9 (0x9), region = 128 }
 0x568   : > { %s1779_s21 = sld [smem:[#allocation13_spill]] }
 0x569   : > { %s1780_s22 = sld [smem:[#allocation15_spill]] }
 0x56a   : > { %s1781_s23 = sld [smem:[#allocation17_spill]] }
 0x56c   :  { %1010 = vsyncpa [#allocation7], 1 }
 0x56d   :  { %1012 = vsyncpa [#allocation7 + $0x1], 1 }

</bundles_post_ra>
